<compile_context>
chip_gen: v6e
topology: v6e:2x2x1
jax: 0.10.0
libtpu: 0.0.40
codegen_flags: <defaults>
</compile_context>

<pallas_src>
import jax
import jax.numpy as jnp
from jax.experimental import pallas as pl
from jax.experimental.pallas import tpu as pltpu


def _round_up(x, m):
    return (x + m - 1) // m * m


def _mlp_kernel(
    x_ref,
    w1_ref, b1_ref,
    w2_ref, b2_ref,
    w3_ref, b3_ref,
    wh_ref, bh_ref,
    out_ref,
):
    # fc1 + folded bn1 -> relu      (dropout = identity in eval)
    h1 = jnp.dot(x_ref[...], w1_ref[...], preferred_element_type=jnp.float32)
    h1 = jnp.maximum(h1 + b1_ref[...], 0.0)

    # fc2 + folded bn2 -> relu
    h2 = jnp.dot(h1.astype(jnp.bfloat16), w2_ref[...],
                 preferred_element_type=jnp.float32)
    h2 = jnp.maximum(h2 + b2_ref[...], 0.0)

    # fc3 -> relu
    h3 = jnp.dot(h2.astype(jnp.bfloat16), w3_ref[...],
                 preferred_element_type=jnp.float32)
    h3 = jnp.maximum(h3 + b3_ref[...], 0.0)

    # fused task heads: one lane-dense (TILE_B, 128) output slab
    out_ref[...] = (
        jnp.dot(h3.astype(jnp.bfloat16), wh_ref[...],
                preferred_element_type=jnp.float32)
        + bh_ref[...]
    )


def multitask_mlp_forward(x, params):
    """Runs the fused MLP kernel. x: [B, input_size] float32.

    Returns (workout [B, num_classes], calories [B, 1]) in float32.
    """
    if x.ndim == 1:
        x = x[None, :]
    x = x.astype(jnp.float32)
    B, input_size = x.shape
    C = params["ww"].shape[1]

    eps = 1e-5
    # --- Fold eval-mode BatchNorm into the weights/biases (all in f32). ---
    s1 = params["bn1_gamma"] / jnp.sqrt(params["bn1_var"] + eps)
    s2 = params["bn2_gamma"] / jnp.sqrt(params["bn2_var"] + eps)
    w1 = params["w1"] * s1[None, :]
    b1 = (params["b1"] - params["bn1_mean"]) * s1 + params["bn1_beta"]
    w2 = params["w2"] * s2[None, :]
    b2 = (params["b2"] - params["bn2_mean"]) * s2 + params["bn2_beta"]
    w3 = params["w3"]
    b3 = params["b3"]

    # --- Fuse the two heads into one zero-padded, lane-dense (32, 128) slab. ---
    HEAD_W = max(128, _round_up(C + 1, 128))
    wh = jnp.zeros((32, HEAD_W), jnp.float32)
    wh = wh.at[:, :C].set(params["ww"]).at[:, C].set(params["wc"][:, 0])
    bh = jnp.zeros((1, HEAD_W), jnp.float32)
    bh = bh.at[0, :C].set(params["bw"]).at[0, C].set(params["bc"][0])

    # --- Batch tiling: pad B up to a sublane/tile multiple, grid over batch. ---
    TILE_B = 512 if B > 512 else _round_up(B, 8)
    B_pad = _round_up(B, TILE_B)
    if B_pad != B:
        x = jnp.pad(x, ((0, B_pad - B), (0, 0)))
    n_tiles = pl.cdiv(B_pad, TILE_B)

    row = lambda v: v.reshape(1, -1).astype(jnp.float32)
    bf = lambda v: v.astype(jnp.bfloat16)

    args = (
        bf(x),
        bf(w1), row(b1),
        bf(w2), row(b2),
        bf(w3), row(b3),
        bf(wh), bh,
    )

    const = lambda i: (0, 0)
    in_specs = [
        pl.BlockSpec((TILE_B, input_size), lambda i: (i, 0)),
        pl.BlockSpec((input_size, 128), const), pl.BlockSpec((1, 128), const),
        pl.BlockSpec((128, 64), const),         pl.BlockSpec((1, 64), const),
        pl.BlockSpec((64, 32), const),          pl.BlockSpec((1, 32), const),
        pl.BlockSpec((32, HEAD_W), const),      pl.BlockSpec((1, HEAD_W), const),
    ]
    out_specs = pl.BlockSpec((TILE_B, HEAD_W), lambda i: (i, 0))
    out_shape = jax.ShapeDtypeStruct((B_pad, HEAD_W), jnp.float32)

    flops = 2 * B_pad * (input_size * 128 + 128 * 64 + 64 * 32 + 32 * HEAD_W)
    bytes_accessed = (
        B_pad * input_size * 2                                    # x (bf16)
        + (input_size * 128 + 128 * 64 + 64 * 32 + 32 * HEAD_W) * 2  # weights
        + (128 + 64 + 32 + HEAD_W) * 4                            # biases (f32)
        + B_pad * HEAD_W * 4                                      # output (f32)
    )

    out = pl.pallas_call(
        _mlp_kernel,
        out_shape=out_shape,
        grid=(n_tiles,),
        in_specs=in_specs,
        out_specs=out_specs,
        compiler_params=pltpu.CompilerParams(
            dimension_semantics=("parallel",)),
        cost_estimate=pl.CostEstimate(
            flops=int(flops), transcendentals=0,
            bytes_accessed=int(bytes_accessed)),
    )(*args)

    workout = out[:B, :C]
    calories = out[:B, C:C + 1]
    return workout, calories


def init_params(key, input_size, num_classes):
    """Deterministic synthetic parameters matching MultiTaskMLP's shapes."""
    dims = [
        ("w1", (input_size, 128)), ("b1", (128,)),
        ("w2", (128, 64)), ("b2", (64,)),
        ("w3", (64, 32)), ("b3", (32,)),
        ("ww", (32, num_classes)), ("bw", (num_classes,)),
        ("wc", (32, 1)), ("bc", (1,)),
    ]
    params = {}
    keys = jax.random.split(key, len(dims))
    for (name, shape), k in zip(dims, keys):
        params[name] = jax.random.normal(k, shape, jnp.float32) * 0.05
    # BatchNorm affine + running stats (deterministic, non-trivial).
    k1, k2, k3, k4 = jax.random.split(jax.random.fold_in(key, 123), 4)
    params["bn1_gamma"] = 1.0 + 0.1 * jax.random.normal(k1, (128,), jnp.float32)
    params["bn1_beta"] = 0.1 * jax.random.normal(k2, (128,), jnp.float32)
    params["bn1_mean"] = 0.05 * jax.random.normal(k3, (128,), jnp.float32)
    params["bn1_var"] = jnp.abs(1.0 + 0.1 * jax.random.normal(k4, (128,), jnp.float32))
    k1, k2, k3, k4 = jax.random.split(jax.random.fold_in(key, 456), 4)
    params["bn2_gamma"] = 1.0 + 0.1 * jax.random.normal(k1, (64,), jnp.float32)
    params["bn2_beta"] = 0.1 * jax.random.normal(k2, (64,), jnp.float32)
    params["bn2_mean"] = 0.05 * jax.random.normal(k3, (64,), jnp.float32)
    params["bn2_var"] = jnp.abs(1.0 + 0.1 * jax.random.normal(k4, (64,), jnp.float32))
    return params


def _reference(x, params):
    """Plain-JAX f32 reference for sanity checking."""
    eps = 1e-5
    s1 = params["bn1_gamma"] / jnp.sqrt(params["bn1_var"] + eps)
    t1 = params["bn1_beta"] - params["bn1_mean"] * s1
    s2 = params["bn2_gamma"] / jnp.sqrt(params["bn2_var"] + eps)
    t2 = params["bn2_beta"] - params["bn2_mean"] * s2
    h = jnp.maximum((x @ params["w1"] + params["b1"]) * s1 + t1, 0.0)
    h = jnp.maximum((h @ params["w2"] + params["b2"]) * s2 + t2, 0.0)
    h = jnp.maximum(h @ params["w3"] + params["b3"], 0.0)
    return h @ params["ww"] + params["bw"], h @ params["wc"] + params["bc"]


if __name__ == "__main__":
    key = jax.random.PRNGKey(0)
    batch, input_size, num_classes = 8, 32, 5

    kx, kp = jax.random.split(key)
    x = jax.random.normal(kx, (batch, input_size), jnp.float32)
    params = init_params(kp, input_size, num_classes)

    workout, calories = multitask_mlp_forward(x, params)
    jax.block_until_ready((workout, calories))

    ref_w, ref_c = _reference(x, params)
    assert workout.shape == (batch, num_classes)
    assert calories.shape == (batch, 1)
    # bf16 MXU operands with f32 accumulation -> looser tolerance than pure f32.
    assert jnp.allclose(workout, ref_w, atol=2e-2, rtol=2e-2)
    assert jnp.allclose(calories, ref_c, atol=2e-2, rtol=2e-2)

    print("KERNEL_OK")
</pallas_src>

<mosaic_0001>
module attributes {stable_mosaic.version = 11 : i64} {
  func.func @_mlp_kernel(%arg0: i32, %arg1: memref<8x32xbf16, #tpu.memory_space<vmem>>, %arg2: memref<32x128xbf16, #tpu.memory_space<vmem>>, %arg3: memref<1x128xf32, #tpu.memory_space<vmem>>, %arg4: memref<128x64xbf16, #tpu.memory_space<vmem>>, %arg5: memref<1x64xf32, #tpu.memory_space<vmem>>, %arg6: memref<64x32xbf16, #tpu.memory_space<vmem>>, %arg7: memref<1x32xf32, #tpu.memory_space<vmem>>, %arg8: memref<32x128xbf16, #tpu.memory_space<vmem>>, %arg9: memref<1x128xf32, #tpu.memory_space<vmem>>, %arg10: memref<8x128xf32, #tpu.memory_space<vmem>>) attributes {dimension_semantics = [#tpu.dimension_semantics<parallel>], iteration_bounds = array<i64: 1>, scalar_prefetch = 0 : i64, scratch_operands = 0 : i64, tpu.core_type = #tpu.core_type<tc>, window_params = [{transform_indices = @transform_0, window_bounds = array<i64: 8, 32>}, {pipeline_mode = #tpu.pipeline_mode<synchronous>, transform_indices = @transform_1, window_bounds = array<i64: 32, 128>}, {pipeline_mode = #tpu.pipeline_mode<synchronous>, transform_indices = @transform_2, window_bounds = array<i64: 1, 128>}, {pipeline_mode = #tpu.pipeline_mode<synchronous>, transform_indices = @transform_3, window_bounds = array<i64: 128, 64>}, {pipeline_mode = #tpu.pipeline_mode<synchronous>, transform_indices = @transform_4, window_bounds = array<i64: 1, 64>}, {pipeline_mode = #tpu.pipeline_mode<synchronous>, transform_indices = @transform_5, window_bounds = array<i64: 64, 32>}, {pipeline_mode = #tpu.pipeline_mode<synchronous>, transform_indices = @transform_6, window_bounds = array<i64: 1, 32>}, {pipeline_mode = #tpu.pipeline_mode<synchronous>, transform_indices = @transform_7, window_bounds = array<i64: 32, 128>}, {pipeline_mode = #tpu.pipeline_mode<synchronous>, transform_indices = @transform_8, window_bounds = array<i64: 1, 128>}, {transform_indices = @transform_9, window_bounds = array<i64: 8, 128>}]} {
    %c0 = arith.constant 0 : index
    %c0_0 = arith.constant 0 : index
    %0 = vector.load %arg1[%c0, %c0_0] : memref<8x32xbf16, #tpu.memory_space<vmem>>, vector<8x32xbf16>
    %c0_1 = arith.constant 0 : index
    %c0_2 = arith.constant 0 : index
    %1 = vector.load %arg2[%c0_1, %c0_2] : memref<32x128xbf16, #tpu.memory_space<vmem>>, vector<32x128xbf16>
    %cst = arith.constant dense<0.000000e+00> : vector<8x128xf32>
    %2 = tpu.matmul %0, %1, %cst {dimension_numbers = #tpu.dot_dimension_numbers<[1], [0], [0], [1], [0, 0, 1, 1], [], []>} : vector<8x32xbf16>, vector<32x128xbf16>, vector<8x128xf32> -> vector<8x128xf32>
    %c0_3 = arith.constant 0 : index
    %c0_4 = arith.constant 0 : index
    %3 = vector.load %arg3[%c0_3, %c0_4] : memref<1x128xf32, #tpu.memory_space<vmem>>, vector<1x128xf32>
    %4 = vector.broadcast %3 : vector<1x128xf32> to vector<8x128xf32>
    %5 = arith.addf %2, %4 : vector<8x128xf32>
    %cst_5 = arith.constant 0.000000e+00 : f32
    %6 = vector.broadcast %cst_5 : f32 to vector<8x128xf32>
    %7 = arith.maximumf %5, %6 : vector<8x128xf32>
    %8 = arith.truncf %7 : vector<8x128xf32> to vector<8x128xbf16>
    %c0_6 = arith.constant 0 : index
    %c0_7 = arith.constant 0 : index
    %9 = vector.load %arg4[%c0_6, %c0_7] : memref<128x64xbf16, #tpu.memory_space<vmem>>, vector<128x64xbf16>
    %cst_8 = arith.constant dense<0.000000e+00> : vector<8x64xf32>
    %10 = tpu.matmul %8, %9, %cst_8 {dimension_numbers = #tpu.dot_dimension_numbers<[1], [0], [0], [1], [0, 0, 1, 1], [], []>} : vector<8x128xbf16>, vector<128x64xbf16>, vector<8x64xf32> -> vector<8x64xf32>
    %c0_9 = arith.constant 0 : index
    %c0_10 = arith.constant 0 : index
    %11 = vector.load %arg5[%c0_9, %c0_10] : memref<1x64xf32, #tpu.memory_space<vmem>>, vector<1x64xf32>
    %12 = vector.broadcast %11 : vector<1x64xf32> to vector<8x64xf32>
    %13 = arith.addf %10, %12 : vector<8x64xf32>
    %cst_11 = arith.constant 0.000000e+00 : f32
    %14 = vector.broadcast %cst_11 : f32 to vector<8x64xf32>
    %15 = arith.maximumf %13, %14 : vector<8x64xf32>
    %16 = arith.truncf %15 : vector<8x64xf32> to vector<8x64xbf16>
    %c0_12 = arith.constant 0 : index
    %c0_13 = arith.constant 0 : index
    %17 = vector.load %arg6[%c0_12, %c0_13] : memref<64x32xbf16, #tpu.memory_space<vmem>>, vector<64x32xbf16>
    %cst_14 = arith.constant dense<0.000000e+00> : vector<8x32xf32>
    %18 = tpu.matmul %16, %17, %cst_14 {dimension_numbers = #tpu.dot_dimension_numbers<[1], [0], [0], [1], [0, 0, 1, 1], [], []>} : vector<8x64xbf16>, vector<64x32xbf16>, vector<8x32xf32> -> vector<8x32xf32>
    %c0_15 = arith.constant 0 : index
    %c0_16 = arith.constant 0 : index
    %19 = vector.load %arg7[%c0_15, %c0_16] : memref<1x32xf32, #tpu.memory_space<vmem>>, vector<1x32xf32>
    %20 = vector.broadcast %19 : vector<1x32xf32> to vector<8x32xf32>
    %21 = arith.addf %18, %20 : vector<8x32xf32>
    %cst_17 = arith.constant 0.000000e+00 : f32
    %22 = vector.broadcast %cst_17 : f32 to vector<8x32xf32>
    %23 = arith.maximumf %21, %22 : vector<8x32xf32>
    %24 = arith.truncf %23 : vector<8x32xf32> to vector<8x32xbf16>
    %c0_18 = arith.constant 0 : index
    %c0_19 = arith.constant 0 : index
    %25 = vector.load %arg8[%c0_18, %c0_19] : memref<32x128xbf16, #tpu.memory_space<vmem>>, vector<32x128xbf16>
    %cst_20 = arith.constant dense<0.000000e+00> : vector<8x128xf32>
    %26 = tpu.matmul %24, %25, %cst_20 {dimension_numbers = #tpu.dot_dimension_numbers<[1], [0], [0], [1], [0, 0, 1, 1], [], []>} : vector<8x32xbf16>, vector<32x128xbf16>, vector<8x128xf32> -> vector<8x128xf32>
    %c0_21 = arith.constant 0 : index
    %c0_22 = arith.constant 0 : index
    %27 = vector.load %arg9[%c0_21, %c0_22] : memref<1x128xf32, #tpu.memory_space<vmem>>, vector<1x128xf32>
    %28 = vector.broadcast %27 : vector<1x128xf32> to vector<8x128xf32>
    %29 = arith.addf %26, %28 : vector<8x128xf32>
    %c0_23 = arith.constant 0 : index
    %c0_24 = arith.constant 0 : index
    %30 = vector.load %arg10[%c0_23, %c0_24] : memref<8x128xf32, #tpu.memory_space<vmem>>, vector<8x128xf32>
    tpu.vector_store %arg10[%c0_23, %c0_24], %29 {strides = array<i32>} : memref<8x128xf32, #tpu.memory_space<vmem>>, vector<8x128xf32>,
    return
  }
  func.func @transform_0(%arg0: i32) -> (i32, i32) {
    %c0_i32 = arith.constant 0 : i32
    %c0_i32_0 = arith.constant 0 : i32
    return %arg0, %c0_i32 : i32, i32
  }
  func.func @transform_1(%arg0: i32) -> (i32, i32) {
    %c0_i32 = arith.constant 0 : i32
    %c0_i32_0 = arith.constant 0 : i32
    %c0_i32_1 = arith.constant 0 : i32
    return %c0_i32, %c0_i32_0 : i32, i32
  }
  func.func @transform_2(%arg0: i32) -> (i32, i32) {
    %c0_i32 = arith.constant 0 : i32
    %c0_i32_0 = arith.constant 0 : i32
    %c0_i32_1 = arith.constant 0 : i32
    return %c0_i32, %c0_i32_0 : i32, i32
  }
  func.func @transform_3(%arg0: i32) -> (i32, i32) {
    %c0_i32 = arith.constant 0 : i32
    %c0_i32_0 = arith.constant 0 : i32
    %c0_i32_1 = arith.constant 0 : i32
    return %c0_i32, %c0_i32_0 : i32, i32
  }
  func.func @transform_4(%arg0: i32) -> (i32, i32) {
    %c0_i32 = arith.constant 0 : i32
    %c0_i32_0 = arith.constant 0 : i32
    %c0_i32_1 = arith.constant 0 : i32
    return %c0_i32, %c0_i32_0 : i32, i32
  }
  func.func @transform_5(%arg0: i32) -> (i32, i32) {
    %c0_i32 = arith.constant 0 : i32
    %c0_i32_0 = arith.constant 0 : i32
    %c0_i32_1 = arith.constant 0 : i32
    return %c0_i32, %c0_i32_0 : i32, i32
  }
  func.func @transform_6(%arg0: i32) -> (i32, i32) {
    %c0_i32 = arith.constant 0 : i32
    %c0_i32_0 = arith.constant 0 : i32
    %c0_i32_1 = arith.constant 0 : i32
    return %c0_i32, %c0_i32_0 : i32, i32
  }
  func.func @transform_7(%arg0: i32) -> (i32, i32) {
    %c0_i32 = arith.constant 0 : i32
    %c0_i32_0 = arith.constant 0 : i32
    %c0_i32_1 = arith.constant 0 : i32
    return %c0_i32, %c0_i32_0 : i32, i32
  }
  func.func @transform_8(%arg0: i32) -> (i32, i32) {
    %c0_i32 = arith.constant 0 : i32
    %c0_i32_0 = arith.constant 0 : i32
    %c0_i32_1 = arith.constant 0 : i32
    return %c0_i32, %c0_i32_0 : i32, i32
  }
  func.func @transform_9(%arg0: i32) -> (i32, i32) {
    %c0_i32 = arith.constant 0 : i32
    %c0_i32_0 = arith.constant 0 : i32
    return %arg0, %c0_i32 : i32, i32
  }
}

</mosaic_0001>

<bundles_post_ra>
// kernel: tpu_custom_call.1
= control target key start
LH: loop header
LB: loop body
LE: loop exit
PB: predicated region body
PF: predicated region fallthrough
CT: control target
= control target key end

     0   :  { %v515_v1 = vmov 0.0   ;;  %vm516_vm0 = vmmov 0   ;;  %vm58_vm1 = vcmask 261120   ;;  %s660_s0 = inlined_call_operand.vmem [shape: bf16[8,32], index: 0, kind: input, shape index: {}]   ;;  %s661_s1 = inlined_call_operand.vmem [shape: bf16[32,128], index: 1, kind: input, shape index: {}]   ;;  %s662_s2 = inlined_call_operand.vmem [shape: f32[1,128], index: 2, kind: input, shape index: {}]   ;;  %s663_s3 = inlined_call_operand.vmem [shape: bf16[128,64], index: 3, kind: input, shape index: {}]   ;;  %s664_s4 = inlined_call_operand.vmem [shape: f32[1,64], index: 4, kind: input, shape index: {}]   ;;  %s665_s5 = inlined_call_operand.vmem [shape: bf16[64,32], index: 5, kind: input, shape index: {}]   ;;  %s666_s6 = inlined_call_operand.vmem [shape: f32[1,32], index: 6, kind: input, shape index: {}]   ;;  %s667_s7 = inlined_call_operand.vmem [shape: bf16[32,128], index: 7, kind: input, shape index: {}]   ;;  %s668_s8 = inlined_call_operand.vmem [shape: f32[1,128], index: 8, kind: input, shape index: {}]   ;;  %s669_s9 = inlined_call_operand.hbm [shape: f32[8,128], index: 9, kind: output, shape index: {}]  }
   0x1   :  { %v477_v0 = vld [vmem:[%s661_s1 + $0x8] sm:$0xff]   ;;  %426 = vmatprep.subr.bf16.mxu0 %v515_v1  ;;  %434 = vmatprep.subr.bf16.mxu1 %v515_v1  ;;  %v478_v2 = vld [vmem:[%s661_s1] sm:$0xff]   ;;  %v479_v3 = vld [vmem:[%s663_s3 + $0x38] sm:$0xff]  }
   0x2   :  { %427 = vmatpush3.bf16.msra.mxu0 %v477_v0  ;;  %430 = vmatprep.mubr.msk.bf16.mxu0 %vm516_vm0, %v515_v1  ;;  %v480_v4 = vld [vmem:[%s663_s3 + $0x30] sm:$0xff]   ;;  %v34_v5 = vld [vmem:[%s660_s0] sm:$0xf]  ;;  %v481_v6 = vld [vmem:[%s663_s3 + $0x28] sm:$0xff]  }
   0x3   :  { %428 = vmatprep.subr.bf16.mxu0 %v515_v1  ;;  %450 = vmatprep.mubr.msk.bf16.mxu1 %vm516_vm0, %v515_v1  ;;  %v482_v7 = vld [vmem:[%s663_s3 + $0x20] sm:$0xff]  }
   0x4   :  { %435 = vmatpush3.bf16.msra.mxu1 %v479_v3 }
   0x5   :  { %436 = vmatprep.subr.bf16.mxu1 %v515_v1 }
   0x6   :  { %429 = vmatpush3.bf16.msra.mxu0 %v478_v2 }
   0x7   :  { %454 = vmatprep.subr.bf16.mxu0 %v515_v1 }
   0x8   :  { %437 = vmatpush3.bf16.msra.mxu1 %v480_v4 }
   0x9   :  { %431 = vmatmul.mubr.msk.bf16.vlgmr.msra.gmra.mxu0 %vm58_vm1, %v34_v5  ;;  %438 = vmatprep.subr.bf16.mxu1 %v515_v1 }
   0xa   :  { %462 = vmatprep.mubr.msk.bf16.mxu0 %vm516_vm0, %v515_v1 }
   0xc   :  { %439 = vmatpush3.bf16.msra.mxu1 %v481_v6 }
   0xd   :  { %440 = vmatprep.subr.bf16.mxu1 %v515_v1 }
   0xe   :  { %14 = vsyncpa [#allocation3], 0  ;;  %v483_v8 = vld [vmem:[%s663_s3 + $0x18] sm:$0xff]   ;;  %v484_v9 = vld [vmem:[%s663_s3 + $0x10] sm:$0xff]   ;;  %vm256_vm2 = vcmask 523264   ;;  %s517_s22 = smov [#allocation2]  }
   0xf   :  { %v485_v10 = vld [vmem:[%s663_s3 + $0x8] sm:$0xff]   ;;  %v486_v11 = vld [vmem:[%s663_s3] sm:$0xff]   ;;  %v487_v12 = vld [vmem:[%s665_s5 + $0x18] sm:$0xff]  }
  0x10   :  { %441 = vmatpush3.bf16.msra.mxu1 %v482_v7  ;;  %455 = vmatpush3.bf16.msra.mxu0 %v487_v12  ;;  %v488_v13 = vld [vmem:[%s665_s5 + $0x10] sm:$0xff]   ;;  %v383_v14 = vld [vmem:[%s662_s2] ss:$0 sm:$0xff]  ;;  %v489_v22 = vld [vmem:[%s665_s5 + $0x8] sm:$0xff]  }
  0x11   :  { %442 = vmatprep.subr.bf16.mxu1 %v515_v1  ;;  %456 = vmatprep.subr.bf16.mxu0 %v515_v1  ;;  %v490_v23 = vld [vmem:[%s665_s5] sm:$0xff]   ;;  %v491_v30 = vld [vmem:[%s667_s7 + $0x8] sm:$0xff]  }
  0x12   :  { %v387_v24 = vld [vmem:[%s664_s4] ss:$0 sm:$0xff] }
  0x13   :  { %v492_v33 = vld [vmem:[%s667_s7] sm:$0xff]   ;;  %s375_s7 = sshll.u32 %s517_s22, 4  ;;  %s376_s7 = int_to_ptr.vmem [resolvable:$true] %s375_s7 }
  0x14   :  { %443 = vmatpush3.bf16.msra.mxu1 %v483_v8  ;;  %457 = vmatpush3.bf16.msra.mxu0 %v488_v13  ;;  %v396_v34 = vld [vmem:[%s666_s6] ss:$0 sm:$0xff]  ;;  %s493_s6 = scalar_lea.vmem %s376_s7, 128  ;;  %p498_p1 = scmp.lt.s32.totalorder %s376_s7, %s376_s7 }
  0x15   :  { %444 = vmatprep.subr.bf16.mxu1 %v515_v1  ;;  %458 = vmatprep.subr.bf16.mxu0 %v515_v1  ;;  %v402_v42 = vld [vmem:[%s668_s8] ss:$0 sm:$0xff]  ;;  %p494_p0 = scmp.ne.s32.totalorder %s376_s7, %s493_s6  ;;  %p499_p2 = scmp.lt.s32.totalorder %s493_s6, %s493_s6 }
  0x17   :  { %p500_p3 = por %p499_p2, %p498_p1 }
  0x18   :  { %445 = vmatpush3.bf16.msra.mxu1 %v484_v9  ;;  %459 = vmatpush3.bf16.msra.mxu0 %v489_v22 }
  0x19   :  { %446 = vmatprep.subr.bf16.mxu1 %v515_v1  ;;  %460 = vmatprep.subr.bf16.mxu0 %v515_v1  ;;  %p501_p4 = pnand %p500_p3, %p494_p0 }
  0x1c   :  { %447 = vmatpush3.bf16.msra.mxu1 %v485_v10  ;;  %461 = vmatpush3.bf16.msra.mxu0 %v490_v23 }
  0x1d   :  { %448 = vmatprep.subr.bf16.mxu1 %v515_v1  ;;  %466 = vmatprep.subr.bf16.mxu0 %v515_v1 }
  0x20   :  { %449 = vmatpush3.bf16.msra.mxu1 %v486_v11 }
  0xc9   :  { %v96_v15 = vpop.f32.mrf.mxu0 }
  0xca   :  { %v97_v16 = vadd.f32 %v383_v14, %v96_v15 }
  0xcb   :  { %v432_v17 = vpop.f32.mrf.mxu0 }
  0xcc   :  { %v102_v18 = vmax.f32 %v97_v16, 0.0 }
  0xcd   :  { %v99_v19 = vpop.f32.mrf.mxu0 }
  0xce   :  { %v103_v20 = vpack.c.bf16 %v102_v18, %v102_v18 }
  0xcf   :  { %v433_v21 = vpop.f32.mrf.mxu0 }
  0xd0   :  { %451 = vmatmul.mubr.bf16.vlgmr.msra.gmra.mxu1 %v103_v20 }
 0x190   :  { %v209_v25 = vpop.f32.mrf.mxu1 }
 0x191   :  { %v210_v26 = vadd.f32 %v387_v24, %v209_v25 }
 0x192   :  { %v452_v27 = vpop.f32.mrf.mxu1 }
 0x193   :  { %v215_v28 = vmax.f32 %v210_v26, 0.0 }
 0x194   :  { %v212_v29 = vpop.f32.mrf.mxu1 }
 0x195   :  { %v216_v31 = vpack.c.bf16 %v215_v28, %v215_v28 }
 0x196   :  { %v453_v32 = vpop.f32.mrf.mxu1 }
 0x197   :  { %463 = vmatmul.mubr.msk.bf16.vlgmr.msra.gmra.mxu0 %vm256_vm2, %v216_v31 }
 0x198   :  { %467 = vmatpush3.bf16.msra.mxu0 %v491_v30  ;;  %470 = vmatprep.mubr.msk.bf16.mxu0 %vm516_vm0, %v515_v1 }
 0x199   :  { %468 = vmatprep.subr.bf16.mxu0 %v515_v1 }
 0x19c   :  { %469 = vmatpush3.bf16.msra.mxu0 %v492_v33 }
 0x257   :  { %v294_v35 = vpop.f32.mrf.mxu0 }
 0x258   :  { %v295_v36 = vadd.f32 %v396_v34, %v294_v35 }
 0x259   :  { %v464_v37 = vpop.f32.mrf.mxu0 }
 0x25a   :  { %v300_v38 = vmax.f32 %v295_v36, 0.0 }
 0x25b   :  { %v297_v39 = vpop.f32.mrf.mxu0 }
 0x25c   :  { %v301_v40 = vpack.c.bf16 %v300_v38, %v300_v38 }
 0x25d   :  { %v465_v41 = vpop.f32.mrf.mxu0 }
 0x25e   :  { %471 = vmatmul.mubr.msk.bf16.vlgmr.msra.gmra.mxu0 %vm58_vm1, %v301_v40 }
 0x31e   :  { %v362_v43 = vpop.f32.mrf.mxu0 }
 0x31f   :  { %v363_v44 = vadd.f32 %v402_v42, %v362_v43 }
 0x320   :  { %v472_v45 = vpop.f32.mrf.mxu0 }
 0x321   :  { %368 = vst [vmem:[#allocation2] sm:$0xff] %v363_v44 }
 0x322   :  { %v365_v46 = vpop.f32.mrf.mxu0 }
 0x323   :  { %504 = shalt.err (!%p501_p4)
}
 0x324   :  { %378 = dma.vmem_to_hbm [thread:$0]  %s376_s7, 128, %s669_s9, [#allocation3]   ;;  %v473_v47 = vpop.f32.mrf.mxu0 }
 0x325   :  { %513 = dma.done.wait [#allocation3], 128  }
 0x326   :  { %514 = vsyncadd [#allocation3], 4294967168 }
 0x327   :  { %382 = vsyncpa [#allocation3], 1 }

</bundles_post_ra>
